<compile_context>
chip_gen: v5e
topology: v5e:2x2
jax: 0.10.0
libtpu: 0.0.40
codegen_flags: <defaults>
</compile_context>

<pallas_src>
import math
import functools

import jax
import jax.numpy as jnp
from jax import lax
from jax.experimental import pallas as pl
from jax.experimental.pallas import tpu as pltpu

D_MODEL = 32
MAX_LEN = 512
DROPOUT_P = 0.1


def build_pe_table(d_model: int = D_MODEL, max_len: int = MAX_LEN) -> jnp.ndarray:
    """Deterministic positional-encoding buffer, shape (max_len, d_model)."""
    position = jnp.arange(0, max_len, dtype=jnp.float32)[:, None]          # (L, 1)
    div_term = jnp.exp(
        jnp.arange(0, d_model, 2, dtype=jnp.float32)
        * (-math.log(10000.0) / d_model)
    )                                                                       # (D/2,)
    pe = jnp.zeros((max_len, d_model), dtype=jnp.float32)
    pe = pe.at[:, 0::2].set(jnp.sin(position * div_term))
    pe = pe.at[:, 1::2].set(jnp.cos(position * div_term))
    return pe                                                               # (L, D)


def _lowbias32(x):
    """Integer avalanche hash (lowbias32); uint32 in, uint32 out."""
    x = x ^ (x >> 16)
    x = x * jnp.uint32(0x7FEB352D)
    x = x ^ (x >> 15)
    x = x * jnp.uint32(0x846CA68B)
    x = x ^ (x >> 16)
    return x


def _pe_dropout_kernel(seed_ref, x_ref, pe_ref, o_ref, *,
                       p: float, batch: int, tile_rows: int):
    # x_ref : (tS, B*D) VMEM    pe_ref : (tS, D) VMEM    seed_ref : (1,) SMEM
    pe = pe_ref[...]                                   # (tS, D)
    pe_wide = jnp.tile(pe, (1, batch))                 # (tS, B*D) lane-tile over batch
    y = x_ref[...] + pe_wide

    if p > 0.0:
        rows, cols = y.shape
        # Global element coordinates -> independent mask per tile for free.
        row_base = (pl.program_id(0) * tile_rows).astype(jnp.uint32)
        r = lax.broadcasted_iota(jnp.uint32, (rows, cols), 0) + row_base
        c = lax.broadcasted_iota(jnp.uint32, (rows, cols), 1)
        seed_u = seed_ref[0].astype(jnp.uint32)
        v = (r * jnp.uint32(0x9E3779B1)) ^ (c * jnp.uint32(0x85EBCA77)) \
            ^ (seed_u * jnp.uint32(0xC2B2AE3D))
        bits = _lowbias32(v)                           # uniform uint32
        threshold = jnp.uint32(int(round(p * 4294967296.0)))
        keep = bits >= threshold                       # P(keep) = 1 - p
        scale = jnp.float32(1.0 / (1.0 - p))
        y = jnp.where(keep, y * scale, jnp.float32(0.0))

    o_ref[...] = y


def positional_encoding_forward(x: jnp.ndarray,
                                pe_table: jnp.ndarray,
                                seed: int = 0,
                                p: float = DROPOUT_P,
                                train: bool = True) -> jnp.ndarray:
    """x: (seq_len, batch, d_model) float32. Returns same shape/dtype."""
    S, B, D = x.shape
    pe2d = pe_table[:S]                                # (S, D)

    if (not train) or p <= 0.0:
        # Eval / p==0: pure broadcast add — let XLA fuse it, no kernel overhead.
        return x + pe2d[:, None, :]

    # Lane-dense view: (S, B, D) -> (S, B*D); contiguous, so the reshape is free.
    BD = B * D
    x2d = x.reshape(S, BD)

    # Row tile: multiple of 8 sublanes, capped so the x tile is <= ~2 MiB
    # (double-buffered in+out+pe stays well under the default scoped VMEM on
    # every generation, including v7x's 64 MiB physical VMEM).
    max_rows_by_vmem = max(8, (2 * 1024 * 1024) // (BD * 4))
    tS = min(S, 512, max_rows_by_vmem)
    if tS < S:
        tS = max(8, (tS // 8) * 8)
    grid = (pl.cdiv(S, tS),)

    kernel = functools.partial(_pe_dropout_kernel, p=p, batch=B, tile_rows=tS)
    seed_arr = jnp.array([seed], dtype=jnp.int32)

    out2d = pl.pallas_call(
        kernel,
        out_shape=jax.ShapeDtypeStruct((S, BD), x.dtype),
        grid_spec=pltpu.PrefetchScalarGridSpec(
            num_scalar_prefetch=1,                     # dropout seed -> SMEM
            grid=grid,
            in_specs=[
                pl.BlockSpec((tS, BD), lambda i, seed_ref: (i, 0)),   # x tile
                pl.BlockSpec((tS, D),  lambda i, seed_ref: (i, 0)),   # pe tile
            ],
            out_specs=pl.BlockSpec((tS, BD), lambda i, seed_ref: (i, 0)),
        ),
        compiler_params=pltpu.CompilerParams(
            dimension_semantics=("parallel",),          # v7x: shard rows over 2 TCs
        ),
    )(seed_arr, x2d, pe2d)

    return out2d.reshape(S, B, D)


if __name__ == "__main__":
    seq_len, batch, d_model = 8, 2, D_MODEL

    key = jax.random.PRNGKey(0)
    x = jax.random.normal(key, (seq_len, batch, d_model), dtype=jnp.float32)

    pe_table = build_pe_table(d_model, MAX_LEN)

    # --- Training-mode forward (dropout active, in-kernel counter-based RNG) ---
    out = positional_encoding_forward(x, pe_table, seed=0, p=DROPOUT_P, train=True)
    out = jax.block_until_ready(out)
    assert out.shape == (seq_len, batch, d_model)

    # Every output element must be either exactly 0 (dropped) or
    # (x + pe) / (1 - p) (kept): validates both the add and the dropout math.
    ref_scaled = (x + pe_table[:seq_len][:, None, :]) / (1.0 - DROPOUT_P)
    ok = jnp.isclose(out, ref_scaled, atol=1e-5) | (out == 0.0)
    assert bool(ok.all()), "train-mode output not in {0, (x+pe)/(1-p)}"
    keep_frac = float(jnp.mean((out != 0.0).astype(jnp.float32)))
    assert 0.75 < keep_frac <= 1.0, f"implausible keep fraction {keep_frac}"

    # --- Eval-mode forward (dropout = identity, plain XLA path) ---
    out_eval = positional_encoding_forward(x, pe_table, train=False)
    out_eval = jax.block_until_ready(out_eval)
    ref_eval = x + pe_table[:seq_len][:, None, :]
    assert jnp.allclose(out_eval, ref_eval, atol=1e-6), "eval-mode mismatch"

    print("KERNEL_OK")
</pallas_src>

<mosaic_0001>
module attributes {stable_mosaic.version = 11 : i64} {
  func.func @_pe_dropout_kernel(%arg0: i32, %arg1: memref<1xi32, #tpu.memory_space<smem>>, %arg2: memref<8x64xf32, #tpu.memory_space<vmem>>, %arg3: memref<8x32xf32, #tpu.memory_space<vmem>>, %arg4: memref<8x64xf32, #tpu.memory_space<vmem>>) attributes {dimension_semantics = [#tpu.dimension_semantics<parallel>], iteration_bounds = array<i64: 1>, scalar_prefetch = 1 : i64, scratch_operands = 0 : i64, tpu.core_type = #tpu.core_type<tc>, window_params = [{transform_indices = @transform_0, window_bounds = array<i64: 8, 64>}, {transform_indices = @transform_1, window_bounds = array<i64: 8, 32>}, {transform_indices = @transform_2, window_bounds = array<i64: 8, 64>}]} {
    %c0 = arith.constant 0 : index
    %c0_0 = arith.constant 0 : index
    %0 = vector.load %arg3[%c0, %c0_0] : memref<8x32xf32, #tpu.memory_space<vmem>>, vector<8x32xf32>
    %1 = tpu.concatenate %0, %0 in 1 : vector<8x32xf32>, vector<8x32xf32> -> vector<8x64xf32>
    %c0_1 = arith.constant 0 : index
    %c0_2 = arith.constant 0 : index
    %2 = vector.load %arg2[%c0_1, %c0_2] : memref<8x64xf32, #tpu.memory_space<vmem>>, vector<8x64xf32>
    %3 = arith.addf %2, %1 : vector<8x64xf32>
    %c8_i32 = arith.constant 8 : i32
    %4 = arith.muli %arg0, %c8_i32 : i32
    %5 = tpu.iota {dimensions = array<i32: 0>} : vector<8x64xi32>
    %6 = vector.broadcast %4 : i32 to vector<8x64xi32>
    %7 = arith.addi %5, %6 : vector<8x64xi32>
    %8 = tpu.iota {dimensions = array<i32: 1>} : vector<8x64xi32>
    %c0_3 = arith.constant 0 : index
    %9 = memref.load %arg1[%c0_3] : memref<1xi32, #tpu.memory_space<smem>>
    %c-1640531535_i32 = arith.constant -1640531535 : i32
    %10 = vector.broadcast %c-1640531535_i32 : i32 to vector<8x64xi32>
    %11 = arith.muli %7, %10 : vector<8x64xi32>
    %c-2048144777_i32 = arith.constant -2048144777 : i32
    %12 = vector.broadcast %c-2048144777_i32 : i32 to vector<8x64xi32>
    %13 = arith.muli %8, %12 : vector<8x64xi32>
    %14 = arith.xori %11, %13 : vector<8x64xi32>
    %c-1028477379_i32 = arith.constant -1028477379 : i32
    %15 = arith.muli %9, %c-1028477379_i32 : i32
    %16 = vector.broadcast %15 : i32 to vector<8x64xi32>
    %17 = arith.xori %14, %16 : vector<8x64xi32>
    %c16_i32 = arith.constant 16 : i32
    %18 = vector.broadcast %c16_i32 : i32 to vector<8x64xi32>
    %19 = arith.shrui %17, %18 : vector<8x64xi32>
    %20 = arith.xori %17, %19 : vector<8x64xi32>
    %c2146121005_i32 = arith.constant 2146121005 : i32
    %21 = vector.broadcast %c2146121005_i32 : i32 to vector<8x64xi32>
    %22 = arith.muli %20, %21 : vector<8x64xi32>
    %c15_i32 = arith.constant 15 : i32
    %23 = vector.broadcast %c15_i32 : i32 to vector<8x64xi32>
    %24 = arith.shrui %22, %23 : vector<8x64xi32>
    %25 = arith.xori %22, %24 : vector<8x64xi32>
    %c-2073254261_i32 = arith.constant -2073254261 : i32
    %26 = vector.broadcast %c-2073254261_i32 : i32 to vector<8x64xi32>
    %27 = arith.muli %25, %26 : vector<8x64xi32>
    %c16_i32_4 = arith.constant 16 : i32
    %28 = vector.broadcast %c16_i32_4 : i32 to vector<8x64xi32>
    %29 = arith.shrui %27, %28 : vector<8x64xi32>
    %30 = arith.xori %27, %29 : vector<8x64xi32>
    %c429496730_i32 = arith.constant 429496730 : i32
    %31 = vector.broadcast %c429496730_i32 : i32 to vector<8x64xi32>
    %32 = arith.cmpi uge, %30, %31 : vector<8x64xi32>
    %cst = arith.constant 1.11111116 : f32
    %33 = vector.broadcast %cst : f32 to vector<8x64xf32>
    %34 = arith.mulf %3, %33 : vector<8x64xf32>
    %cst_5 = arith.constant 0.000000e+00 : f32
    %35 = vector.broadcast %cst_5 : f32 to vector<8x64xf32>
    %36 = arith.select %32, %34, %35 : vector<8x64xi1>, vector<8x64xf32>
    %c0_6 = arith.constant 0 : index
    %c0_7 = arith.constant 0 : index
    %37 = vector.load %arg4[%c0_6, %c0_7] : memref<8x64xf32, #tpu.memory_space<vmem>>, vector<8x64xf32>
    tpu.vector_store %arg4[%c0_6, %c0_7], %36 {strides = array<i32>} : memref<8x64xf32, #tpu.memory_space<vmem>>, vector<8x64xf32>,
    return
  }
  func.func @transform_0(%arg0: i32, %arg1: memref<1xi32, #tpu.memory_space<smem>>) -> (i32, i32) {
    %c0_i32 = arith.constant 0 : i32
    %c0_i32_0 = arith.constant 0 : i32
    return %arg0, %c0_i32 : i32, i32
  }
  func.func @transform_1(%arg0: i32, %arg1: memref<1xi32, #tpu.memory_space<smem>>) -> (i32, i32) {
    %c0_i32 = arith.constant 0 : i32
    %c0_i32_0 = arith.constant 0 : i32
    return %arg0, %c0_i32 : i32, i32
  }
  func.func @transform_2(%arg0: i32, %arg1: memref<1xi32, #tpu.memory_space<smem>>) -> (i32, i32) {
    %c0_i32 = arith.constant 0 : i32
    %c0_i32_0 = arith.constant 0 : i32
    return %arg0, %c0_i32 : i32, i32
  }
}

</mosaic_0001>

<bundles_post_ra>
// kernel: tpu_custom_call.1
= control target key start
LH: loop header
LB: loop body
LE: loop exit
PB: predicated region body
PF: predicated region fallthrough
CT: control target
= control target key end

     0   :  { %9 = vsyncpa [#allocation5], 0  ;;  %s217_s0 = inlined_call_operand.<no memory space> [shape: s32[1], index: 0, kind: input, shape index: {}]   ;;  %s218_s1 = inlined_call_operand.hbm [shape: f32[8,64], index: 1, kind: input, shape index: {}]   ;;  %s219_s2 = inlined_call_operand.hbm [shape: f32[8,32], index: 2, kind: input, shape index: {}]   ;;  %s220_s3 = inlined_call_operand.hbm [shape: f32[8,64], index: 3, kind: output, shape index: {}]  }
   0x1   :  { %10 = vsyncpa [#allocation8], 0 }
   0x2   :  { %11 = vsyncpa [#allocation6], 0  ;;  %s17_s14 = sshll.u32 %s218_s1, 4  ;;  %s181_s15 = smov [#allocation4]   ;;  %s18_s14 = int_to_ptr.hbm [resolvable:$true] %s17_s14 }
   0x3   :  { %s19_s16 = sshll.u32 %s181_s15, 4  ;;  %s28_s19 = sshll.u32 %s219_s2, 4  ;;  %s20_s16 = int_to_ptr.vmem [resolvable:$true] %s19_s16  ;;  %s29_s19 = int_to_ptr.hbm [resolvable:$true] %s28_s19 }
   0x4   :  { %22 = dma.hbm_to_vmem [thread:$0]  %s18_s14, 128, %s20_s16, [#allocation5]  }
   0x5   :  { %s182_s20 = smov [#allocation7]  }
   0x6   :  { %s30_s21 = sshll.u32 %s182_s20, 4  ;;  %s31_s21 = int_to_ptr.vmem [resolvable:$true] %s30_s21 }
   0x7   :  { %33 = dma.hbm_to_vmem [thread:$0]  %s29_s19, 128, %s31_s21, [#allocation8]  }
   0x8   :  { %175 = dma.done.wait [#allocation5], 128  }
   0x9   :  { %176 = vsyncadd [#allocation5], 4294967168 }
   0xa   :  { %177 = dma.done.wait [#allocation8], 128  }
   0xb   :  { %178 = vsyncadd [#allocation8], 4294967168  ;;  %v42_v0 = vld [vmem:[#allocation7] sm:$0xff]  ;;  %s183_s1 = smov 32   ;;  %v52_v1 = vlaneseq  ;;  %s62_s23 = smul.u32 3266489917, %s217_s0 }
   0xc   :  { %44 = vrot.lane.b32.xlu0 %v42_v0, %s183_s1  ;;  %vm47_vm0 = vcmask 261120   ;;  %v49_v17 = vld [vmem:[#allocation4] sm:$0xff]  ;;  %s184_s24 = smov [#allocation9]   ;;  %s87_s27 = sshll.u32 %s220_s3, 4  ;;  %vm78_vm2 = vcmask 523264   ;;  %s88_s27 = int_to_ptr.hbm [resolvable:$true] %s87_s27 }
   0xd   :  { %v53_v2 = vshrl.u32 %v52_v1, 7  ;;  %v57_v3 = vand.u32 127, %v52_v1  ;;  %v63_v7 = vstv %s62_s23  ;;  %s85_s25 = sshll.u32 %s184_s24, 4  ;;  %s86_s25 = int_to_ptr.vmem [resolvable:$true] %s85_s25 }
   0xf   :  { %v59_v4 = vmul.u32 2654435761, %v53_v2  ;;  %v60_v5 = vmul.u32 2246822519, %v57_v3 }
  0x11   :  { %v61_v6 = vxor.u32 %v60_v5, %v59_v4 }
  0x13   :  { %v64_v8 = vxor.u32 %v63_v7, %v61_v6 }
  0x15   :  { %v65_v9 = vshrl.u32 %v64_v8, 16 }
  0x17   :  { %v66_v10 = vxor.u32 %v65_v9, %v64_v8 }
  0x19   :  { %v67_v11 = vmul.u32 2146121005, %v66_v10 }
  0x1b   :  { %v68_v12 = vshrl.u32 %v67_v11, 15 }
  0x1d   :  { %v69_v13 = vxor.u32 %v68_v12, %v67_v11 }
  0x1f   :  { %v70_v14 = vmul.u32 2221713035, %v69_v13 }
  0x21   :  { %v71_v15 = vshrl.u32 %v70_v14, 16 }
  0x23   :  { %v72_v16 = vxor.u32 %v71_v15, %v70_v14 }
  0x25   :  { %v98_v18 = vxor.u32 2147483648, %v72_v16 }
  0x27   :  { %vm75_vm1 = vcmp.ge.s32.totalorder %v98_v18, 2576980378 }
  0x7e   :  { %v45_v19 = vpop.permute.xlu0 %44 }
  0x7f   :  { %v48_v20 = vsel %vm47_vm0, %v42_v0, %v45_v19 }
  0x80   :  { %v50_v21 = vadd.f32 %v49_v17, %v48_v20 }
  0x82   :  { %v76_v22 = vmul.f32 1.1111112, %v50_v21 }
  0x84   :  { %v77_v23 = vsel %vm75_vm1, %v76_v22, 0.0 }
  0x85   :  { %79 = vst.msk [vmem:[#allocation9] sm:$0xff] %vm78_vm2, %v77_v23 }
  0x86   :  { %90 = dma.vmem_to_hbm [thread:$0]  %s86_s25, 128, %s88_s27, [#allocation6]  }
  0x87   :  { %179 = dma.done.wait [#allocation6], 128  }
  0x88   :  { %180 = vsyncadd [#allocation6], 4294967168 }
  0x89   :  { %95 = vsyncpa [#allocation5], 1 }
  0x8a   :  { %96 = vsyncpa [#allocation8], 1 }
  0x8b   :  { %97 = vsyncpa [#allocation6], 1 }

</bundles_post_ra>
